<compile_context>
chip_gen: v7x
topology: tpu7x:2x2x1
jax: 0.10.0
libtpu: 0.0.40
codegen_flags: <defaults>
</compile_context>

<pallas_src>
import jax
import jax.numpy as jnp
from jax.experimental import pallas as pl
from jax.experimental.pallas import tpu as pltpu


def _round_up(x, m):
    return ((x + m - 1) // m) * m


def _pad_to(a, shape):
    """Zero-pad `a` up to `shape` (no-op if already that shape)."""
    if tuple(a.shape) == tuple(shape):
        return a
    out = jnp.zeros(shape, a.dtype)
    return out.at[tuple(slice(0, s) for s in a.shape)].set(a)


def _mlp_kernel(x_ref, w1_ref, b1_ref, w2_ref, b2_ref, o_ref):
    # Cast x to bf16 in-register (VPU, hidden under the DMA) -> MXU matmul with
    # f32 accumulation. Bias add + ReLU stay in f32 on the VPU.
    x = x_ref[...].astype(jnp.bfloat16)
    h = jnp.dot(x, w1_ref[...], preferred_element_type=jnp.float32)
    h = jnp.maximum(h + b1_ref[...], 0.0)
    # Second layer: contraction (h_pad) and output (out_pad) dims are lane-dense.
    y = jnp.dot(h.astype(jnp.bfloat16), w2_ref[...],
                preferred_element_type=jnp.float32)
    o_ref[...] = (y + b2_ref[...]).astype(o_ref.dtype)


def _make_spec(block_shape, index_map, buffering=None):
    """BlockSpec, optionally with an explicit pipeline buffer count."""
    if buffering is not None and hasattr(pl, "Buffered"):
        try:
            return pl.BlockSpec(block_shape, index_map,
                                pipeline_mode=pl.Buffered(buffering))
        except TypeError:
            pass  # older jax without pipeline_mode: default double-buffering
    return pl.BlockSpec(block_shape, index_map)


def _pick_tile(n, tile_n):
    # Multiple of 16 (bf16 sublane packing of the in-register casts). Cap so that
    # mid/large N gives >= 2 grid steps (both v7x TensorCores get work); for tiny N
    # this naturally collapses to a single 16-row tile.
    tile = min(tile_n, _round_up(pl.cdiv(n, 2), 16))
    return max(tile, 16)


def neuralnet_forward(x, w1, b1, w2, b2, *, tile_n=512, out_dtype=jnp.float32):
    """Forward pass: x (N, in_size) -> y (N, out_size)."""
    x = jnp.asarray(x)
    n, in_size = x.shape
    hidden = w1.shape[1]
    out_size = w2.shape[1]
    assert w1.shape == (in_size, hidden)
    assert w2.shape == (hidden, out_size)

    # Lane-dense hidden and output dims (padded cols of the output are sliced off).
    h_pad = _round_up(hidden, 128)
    out_pad = _round_up(out_size, 128)

    w1_b = _pad_to(w1.astype(jnp.bfloat16), (in_size, h_pad))
    b1_f = _pad_to(jnp.asarray(b1, jnp.float32).reshape(1, hidden), (1, h_pad))
    w2_b = _pad_to(w2.astype(jnp.bfloat16), (h_pad, out_pad))
    b2_f = _pad_to(jnp.asarray(b2, jnp.float32).reshape(1, out_size), (1, out_pad))

    tile = _pick_tile(n, tile_n)
    grid = (pl.cdiv(n, tile),)   # ragged last tile: Pallas masks the output store

    def call(use_buffering):
        x_buf, w_buf = (3, 1) if use_buffering else (None, None)
        return pl.pallas_call(
            _mlp_kernel,
            out_shape=jax.ShapeDtypeStruct((n, out_pad), out_dtype),
            grid=grid,
            in_specs=[
                # Streamed batch tile of x (input dtype; bf16 cast happens in-kernel).
                _make_spec((tile, in_size), lambda i: (i, 0), buffering=x_buf),
                # Weights / biases stay resident in VMEM across all grid steps.
                _make_spec((in_size, h_pad), lambda i: (0, 0), buffering=w_buf),
                _make_spec((1, h_pad), lambda i: (0, 0), buffering=w_buf),
                _make_spec((h_pad, out_pad), lambda i: (0, 0), buffering=w_buf),
                _make_spec((1, out_pad), lambda i: (0, 0), buffering=w_buf),
            ],
            out_specs=pl.BlockSpec((tile, out_pad), lambda i: (i, 0)),
            compiler_params=pltpu.CompilerParams(
                # Batch rows are independent -> shard grid across both v7x TCs.
                dimension_semantics=("parallel",),
            ),
        )(x, w1_b, b1_f, w2_b, b2_f)

    try:
        y = call(True)
    except Exception:
        # pipeline_mode not supported by this jax/Mosaic build: default buffering.
        y = call(False)

    return y if out_pad == out_size else y[:, :out_size]


def _bf16_mirror_reference(x, w1, b1, w2, b2):
    """Pure-JAX reference mirroring the kernel's bf16 operand casts (f32 accum)."""
    xb = x.astype(jnp.bfloat16).astype(jnp.float32)
    w1b = w1.astype(jnp.bfloat16).astype(jnp.float32)
    w2b = w2.astype(jnp.bfloat16).astype(jnp.float32)
    h = jnp.maximum(xb @ w1b + b1.reshape(1, -1), 0.0)
    return h.astype(jnp.bfloat16).astype(jnp.float32) @ w2b + b2.reshape(1, -1)


if __name__ == "__main__":
    key = jax.random.PRNGKey(0)

    # ---- Case 1: small, aligned problem (hidden = 128, single grid step). ----
    N, IN_SIZE, HIDDEN, OUT_SIZE = 8, 32, 128, 4
    kx, kw1, kb1, kw2, kb2, key = jax.random.split(key, 6)
    x = jax.random.normal(kx, (N, IN_SIZE), dtype=jnp.float32)
    w1 = jax.random.normal(kw1, (IN_SIZE, HIDDEN), jnp.float32) * (2.0 / IN_SIZE) ** 0.5
    b1 = jax.random.normal(kb1, (1, HIDDEN), jnp.float32) * 0.01
    w2 = jax.random.normal(kw2, (HIDDEN, OUT_SIZE), jnp.float32) * (2.0 / HIDDEN) ** 0.5
    b2 = jax.random.normal(kb2, (1, OUT_SIZE), jnp.float32) * 0.01

    y = jax.block_until_ready(neuralnet_forward(x, w1, b1, w2, b2))
    assert y.shape == (N, OUT_SIZE)
    assert jnp.allclose(y, _bf16_mirror_reference(x, w1, b1, w2, b2),
                        atol=1e-2, rtol=1e-2)
    ref_f32 = jnp.maximum(x @ w1 + b1, 0.0) @ w2 + b2
    assert jnp.allclose(y, ref_f32, atol=1e-1, rtol=1e-1)

    # ---- Case 2: unaligned hidden + ragged multi-step grid (exercises padding
    #      of hidden, cdiv grid with masked last tile, and >=2 parallel steps). ----
    N2, IN2, H2, OUT2 = 200, 20, 96, 10
    kx, kw1, kb1, kw2, kb2, key = jax.random.split(key, 6)
    x2 = jax.random.normal(kx, (N2, IN2), dtype=jnp.float32)
    w1_2 = jax.random.normal(kw1, (IN2, H2), jnp.float32) * (2.0 / IN2) ** 0.5
    b1_2 = jax.random.normal(kb1, (1, H2), jnp.float32) * 0.01
    w2_2 = jax.random.normal(kw2, (H2, OUT2), jnp.float32) * (2.0 / H2) ** 0.5
    b2_2 = jax.random.normal(kb2, (1, OUT2), jnp.float32) * 0.01

    y2 = jax.block_until_ready(neuralnet_forward(x2, w1_2, b1_2, w2_2, b2_2))
    assert y2.shape == (N2, OUT2)
    assert jnp.allclose(y2, _bf16_mirror_reference(x2, w1_2, b1_2, w2_2, b2_2),
                        atol=1e-2, rtol=1e-2)
    ref2_f32 = jnp.maximum(x2 @ w1_2 + b1_2, 0.0) @ w2_2 + b2_2
    assert jnp.allclose(y2, ref2_f32, atol=1e-1, rtol=1e-1)

    # TODO(synk): step() / loss_fn are training-time logic, not part of the forward kernel.
    print("KERNEL_OK")
</pallas_src>

<mosaic_0001>
module attributes {stable_mosaic.version = 11 : i64} {
  func.func @_mlp_kernel(%arg0: i32, %arg1: memref<16x32xf32, #tpu.memory_space<vmem>>, %arg2: memref<32x128xbf16, #tpu.memory_space<vmem>>, %arg3: memref<1x128xf32, #tpu.memory_space<vmem>>, %arg4: memref<128x128xbf16, #tpu.memory_space<vmem>>, %arg5: memref<1x128xf32, #tpu.memory_space<vmem>>, %arg6: memref<16x128xf32, #tpu.memory_space<vmem>>) attributes {dimension_semantics = [#tpu.dimension_semantics<parallel>], iteration_bounds = array<i64: 1>, scalar_prefetch = 0 : i64, scratch_operands = 0 : i64, tpu.core_type = #tpu.core_type<tc>, window_params = [{transform_indices = @transform_0, window_bounds = array<i64: 16, 32>}, {pipeline_mode = #tpu.pipeline_mode<synchronous>, transform_indices = @transform_1, window_bounds = array<i64: 32, 128>}, {pipeline_mode = #tpu.pipeline_mode<synchronous>, transform_indices = @transform_2, window_bounds = array<i64: 1, 128>}, {pipeline_mode = #tpu.pipeline_mode<synchronous>, transform_indices = @transform_3, window_bounds = array<i64: 128, 128>}, {pipeline_mode = #tpu.pipeline_mode<synchronous>, transform_indices = @transform_4, window_bounds = array<i64: 1, 128>}, {transform_indices = @transform_5, window_bounds = array<i64: 16, 128>}]} {
    %c0 = arith.constant 0 : index
    %c0_0 = arith.constant 0 : index
    %0 = vector.load %arg1[%c0, %c0_0] : memref<16x32xf32, #tpu.memory_space<vmem>>, vector<16x32xf32>
    %1 = arith.truncf %0 : vector<16x32xf32> to vector<16x32xbf16>
    %c0_1 = arith.constant 0 : index
    %c0_2 = arith.constant 0 : index
    %2 = vector.load %arg2[%c0_1, %c0_2] : memref<32x128xbf16, #tpu.memory_space<vmem>>, vector<32x128xbf16>
    %cst = arith.constant dense<0.000000e+00> : vector<16x128xf32>
    %3 = tpu.matmul %1, %2, %cst {dimension_numbers = #tpu.dot_dimension_numbers<[1], [0], [0], [1], [0, 0, 1, 1], [], []>} : vector<16x32xbf16>, vector<32x128xbf16>, vector<16x128xf32> -> vector<16x128xf32>
    %c0_3 = arith.constant 0 : index
    %c0_4 = arith.constant 0 : index
    %4 = vector.load %arg3[%c0_3, %c0_4] : memref<1x128xf32, #tpu.memory_space<vmem>>, vector<1x128xf32>
    %5 = vector.broadcast %4 : vector<1x128xf32> to vector<16x128xf32>
    %6 = arith.addf %3, %5 : vector<16x128xf32>
    %cst_5 = arith.constant 0.000000e+00 : f32
    %7 = vector.broadcast %cst_5 : f32 to vector<16x128xf32>
    %8 = arith.maximumf %6, %7 : vector<16x128xf32>
    %9 = arith.truncf %8 : vector<16x128xf32> to vector<16x128xbf16>
    %c0_6 = arith.constant 0 : index
    %c0_7 = arith.constant 0 : index
    %10 = vector.load %arg4[%c0_6, %c0_7] : memref<128x128xbf16, #tpu.memory_space<vmem>>, vector<128x128xbf16>
    %cst_8 = arith.constant dense<0.000000e+00> : vector<16x128xf32>
    %11 = tpu.matmul %9, %10, %cst_8 {dimension_numbers = #tpu.dot_dimension_numbers<[1], [0], [0], [1], [0, 0, 1, 1], [], []>} : vector<16x128xbf16>, vector<128x128xbf16>, vector<16x128xf32> -> vector<16x128xf32>
    %c0_9 = arith.constant 0 : index
    %c0_10 = arith.constant 0 : index
    %12 = vector.load %arg5[%c0_9, %c0_10] : memref<1x128xf32, #tpu.memory_space<vmem>>, vector<1x128xf32>
    %13 = vector.broadcast %12 : vector<1x128xf32> to vector<16x128xf32>
    %14 = arith.addf %11, %13 : vector<16x128xf32>
    %c0_11 = arith.constant 0 : index
    %c0_12 = arith.constant 0 : index
    %15 = vector.load %arg6[%c0_11, %c0_12] : memref<16x128xf32, #tpu.memory_space<vmem>>, vector<16x128xf32>
    tpu.vector_store %arg6[%c0_11, %c0_12], %14 {strides = array<i32>} : memref<16x128xf32, #tpu.memory_space<vmem>>, vector<16x128xf32>,
    return
  }
  func.func @transform_0(%arg0: i32) -> (i32, i32) {
    %c0_i32 = arith.constant 0 : i32
    %c0_i32_0 = arith.constant 0 : i32
    return %arg0, %c0_i32 : i32, i32
  }
  func.func @transform_1(%arg0: i32) -> (i32, i32) {
    %c0_i32 = arith.constant 0 : i32
    %c0_i32_0 = arith.constant 0 : i32
    %c0_i32_1 = arith.constant 0 : i32
    return %c0_i32, %c0_i32_0 : i32, i32
  }
  func.func @transform_2(%arg0: i32) -> (i32, i32) {
    %c0_i32 = arith.constant 0 : i32
    %c0_i32_0 = arith.constant 0 : i32
    %c0_i32_1 = arith.constant 0 : i32
    return %c0_i32, %c0_i32_0 : i32, i32
  }
  func.func @transform_3(%arg0: i32) -> (i32, i32) {
    %c0_i32 = arith.constant 0 : i32
    %c0_i32_0 = arith.constant 0 : i32
    %c0_i32_1 = arith.constant 0 : i32
    return %c0_i32, %c0_i32_0 : i32, i32
  }
  func.func @transform_4(%arg0: i32) -> (i32, i32) {
    %c0_i32 = arith.constant 0 : i32
    %c0_i32_0 = arith.constant 0 : i32
    %c0_i32_1 = arith.constant 0 : i32
    return %c0_i32, %c0_i32_0 : i32, i32
  }
  func.func @transform_5(%arg0: i32) -> (i32, i32) {
    %c0_i32 = arith.constant 0 : i32
    %c0_i32_0 = arith.constant 0 : i32
    return %arg0, %c0_i32 : i32, i32
  }
}

</mosaic_0001>

<bundles_post_ra>
// kernel: tpu_custom_call.1
= control target key start
LH: loop header
LB: loop body
LE: loop exit
PB: predicated region body
PF: predicated region fallthrough
CT: control target
= control target key end

     0   :  { %10 = vsyncpa [#allocation3], 0  ;;  %s542_s0 = inlined_call_operand.hbm [shape: f32[8,32], index: 0, kind: input, shape index: {}]   ;;  %s543_s1 = inlined_call_operand.hbm [shape: bf16[32,128], index: 1, kind: input, shape index: {}]   ;;  %s544_s2 = inlined_call_operand.vmem [shape: f32[1,128], index: 2, kind: input, shape index: {}]   ;;  %s545_s3 = inlined_call_operand.hbm [shape: bf16[128,128], index: 3, kind: input, shape index: {}]   ;;  %s546_s4 = inlined_call_operand.vmem [shape: f32[1,128], index: 4, kind: input, shape index: {}]   ;;  %s547_s5 = inlined_call_operand.hbm [shape: f32[8,128], index: 5, kind: output, shape index: {}]  }
   0x1   :  { %11 = vsyncpa [#allocation6], 0 }
   0x2   :  { %12 = vsyncpa [#allocation4], 0 }
   0x3   :  { %17 = vsyncadd [#allocation3], 128  ;;  %s436_s18 = smov [#allocation5]   ;;  %s342_s22 = scalar_lea.hbm %s543_s1, 256 }
   0x4   :  { %s30_s19 = sshll.u32 %s436_s18, 4  ;;  %p343_p0 = scmp.ne.s32.totalorder %s543_s1, %s342_s22  ;;  %s31_s19 = int_to_ptr.vmem [resolvable:$true] %s30_s19 }
   0x5   :  { %p346_p1 = scmp.lt.u32.totalorder %s342_s22, %s543_s1 }
   0x7   :  { %p348_p2 = pnand %p346_p1, %p343_p0 }
   0x9   :  { %351 = shalt.err (!%p348_p2)
}
   0xa   :  { %s352_s27 = scalar_lea.vmem %s31_s19, 256  ;;  %p357_p4 = scmp.lt.s32.totalorder %s31_s19, %s31_s19 }
   0xb   :  { %p353_p3 = scmp.ne.s32.totalorder %s31_s19, %s352_s27  ;;  %p358_p5 = scmp.lt.s32.totalorder %s352_s27, %s352_s27 }
   0xd   :  { %p359_p6 = por %p358_p5, %p357_p4 }
   0xf   :  { %p360_p7 = pnand %p359_p6, %p353_p3 }
  0x11   :  { %363 = shalt.err (!%p360_p7)
}
  0x12   :  { %s437_s28 = smov 64   ;;  %s438_s29 = smov 4  }
  0x13   :  { %36 = dma.hbm_to_vmem [thread:$0]  %s543_s1, 256, %s31_s19, [#allocation6], %s437_s28, %s437_s28, %s438_s29  }
  0x14   :  { %s439_s7 = smov [#allocation2]   ;;  %s364_s11 = scalar_lea.hbm %s542_s0, 128 }
  0x15   :  { %s18_s8 = sshll.u32 %s439_s7, 4  ;;  %p365_p8 = scmp.ne.s32.totalorder %s542_s0, %s364_s11  ;;  %s19_s8 = int_to_ptr.vmem [resolvable:$true] %s18_s8 }
  0x16   :  { %p368_p9 = scmp.lt.u32.totalorder %s364_s11, %s542_s0 }
  0x18   :  { %p370_p10 = pnand %p368_p9, %p365_p8 }
  0x1a   :  { %373 = shalt.err (!%p370_p10)
}
  0x1b   :  { %s374_s16 = scalar_lea.vmem %s19_s8, 128  ;;  %s378_s1 = scalar_lea.vmem %s19_s8, 256 }
  0x1c   :  { %p375_p11 = scmp.ne.s32.totalorder %s19_s8, %s374_s16  ;;  %p379_p12 = scmp.lt.s32.totalorder %s19_s8, %s19_s8 }
  0x1d   :  { %p380_p13 = scmp.lt.s32.totalorder %s378_s1, %s374_s16 }
  0x1f   :  { %p381_p0 = por %p380_p13, %p379_p12 }
  0x21   :  { %p382_p1 = pnand %p381_p0, %p375_p11 }
  0x23   :  { %385 = shalt.err (!%p382_p1)
}
  0x24   :  { %s440_s17 = smov 128   ;;  %s441_s18 = smov 8  }
  0x25   :  { %24 = dma.hbm_to_vmem [thread:$0]  %s542_s0, 128, %s19_s8, [#allocation3], %s440_s17, %s440_s17, %s441_s18  }
  0x26   :  { %s442_s21 = smov [#allocation7]   ;;  %s386_s25 = scalar_lea.hbm %s545_s3, 1024 }
  0x27   :  { %s44_s22 = sshll.u32 %s442_s21, 4  ;;  %p387_p2 = scmp.ne.s32.totalorder %s545_s3, %s386_s25  ;;  %s45_s22 = int_to_ptr.vmem [resolvable:$true] %s44_s22 }
  0x28   :  { %p390_p3 = scmp.lt.u32.totalorder %s386_s25, %s545_s3 }
  0x2a   :  { %p392_p4 = pnand %p390_p3, %p387_p2 }
  0x2c   :  { %395 = shalt.err (!%p392_p4)
}
  0x2d   :  { %s396_s7 = scalar_lea.vmem %s45_s22, 1024  ;;  %p401_p6 = scmp.lt.s32.totalorder %s45_s22, %s45_s22 }
  0x2e   :  { %p397_p5 = scmp.ne.s32.totalorder %s45_s22, %s396_s7  ;;  %p402_p7 = scmp.lt.s32.totalorder %s396_s7, %s396_s7 }
  0x30   :  { %p403_p8 = por %p402_p7, %p401_p6 }
  0x32   :  { %p404_p9 = pnand %p403_p8, %p397_p5 }
  0x34   :  { %407 = shalt.err (!%p404_p9)
}
  0x35   :  { %50 = dma.hbm_to_vmem [thread:$0]  %s545_s3, 1024, %s45_s22, [#allocation6], %s437_s28, %s437_s28, %s438_s29  }
  0x36   :  { %430 = dma.done.wait [#allocation3], 256  }
  0x37   :  { %431 = vsyncadd [#allocation3], 4294967040 }
  0x38   :  { %432 = dma.done.wait [#allocation6], 1280  }
  0x39   :  { %433 = vsyncadd [#allocation6], 4294966016  ;;  %v443_v0 = vmov 0.0   ;;  %vm444_vm0 = vmmov 0   ;;  %v332_v1 = vld [vmem:[#allocation5] sm:$0xff]   ;;  %v333_v2 = vld [vmem:[#allocation5 + $0x8] sm:$0xff]  }
  0x3a   :  { %294 = vmatprep.subr.bf16.mxu0 %v443_v0  ;;  %298 = vmatprep.mubr.msk.bf16.mxu0 %vm444_vm0, %v443_v0  ;;  %v63_v3 = vld [vmem:[#allocation2] sm:$0xff]  ;;  %v64_v4 = vld [vmem:[#allocation2 + $0x8] sm:$0xff]  ;;  %vm89_vm1 = vcmask 261120   ;;  %v336_v8 = vld [vmem:[#allocation7 + $0x10] sm:$0xff]  }
  0x3b   :  { %302 = vmatprep.subr.bf16.mxu1 %v443_v0  ;;  %318 = vmatprep.mubr.msk.bf16.mxu1 %vm444_vm0, %v443_v0  ;;  %v334_v5 = vld [vmem:[#allocation7] sm:$0xff]   ;;  %v65_v6 = vpack.c.bf16 %v64_v4, %v63_v3  ;;  %v335_v7 = vld [vmem:[#allocation7 + $0x8] sm:$0xff]   ;;  %v337_v9 = vld [vmem:[#allocation7 + $0x18] sm:$0xff]  }
  0x3c   :  { %295 = vmatpush3.bf16.msra.mxu0 %v332_v1  ;;  %303 = vmatpush3.bf16.msra.mxu1 %v334_v5  ;;  %v338_v10 = vld [vmem:[#allocation7 + $0x20] sm:$0xff]   ;;  %v339_v11 = vld [vmem:[#allocation7 + $0x28] sm:$0xff]   ;;  %v340_v12 = vld [vmem:[#allocation7 + $0x30] sm:$0xff]  }
  0x3d   :  { %296 = vmatprep.subr.bf16.mxu0 %v443_v0  ;;  %304 = vmatprep.subr.bf16.mxu1 %v443_v0  ;;  %v341_v13 = vld [vmem:[#allocation7 + $0x38] sm:$0xff]   ;;  %v269_v14 = vld [vmem:[%s544_s2] ss:$0 sm:$0xff] }
  0x3e   :  { %v273_v24 = vld [vmem:[%s546_s4] ss:$0 sm:$0xff] }
  0x40   :  { %297 = vmatpush3.bf16.msra.mxu0 %v333_v2  ;;  %305 = vmatpush3.bf16.msra.mxu1 %v335_v7 }
  0x41   :  { %306 = vmatprep.subr.bf16.mxu1 %v443_v0 }
  0x43   :  { %299 = vmatmul.mubr.msk.bf16.vlgmr.msra.gmra.mrb[0].mxu0 %vm89_vm1, %v65_v6 }
  0x44   :  { %307 = vmatpush3.bf16.msra.mxu1 %v336_v8 }
  0x45   :  { %308 = vmatprep.subr.bf16.mxu1 %v443_v0 }
  0x48   :  { %309 = vmatpush3.bf16.msra.mxu1 %v337_v9 }
  0x49   :  { %310 = vmatprep.subr.bf16.mxu1 %v443_v0 }
  0x4c   :  { %311 = vmatpush3.bf16.msra.mxu1 %v338_v10 }
  0x4d   :  { %312 = vmatprep.subr.bf16.mxu1 %v443_v0 }
  0x50   :  { %313 = vmatpush3.bf16.msra.mxu1 %v339_v11 }
  0x51   :  { %314 = vmatprep.subr.bf16.mxu1 %v443_v0 }
  0x54   :  { %315 = vmatpush3.bf16.msra.mxu1 %v340_v12 }
  0x55   :  { %316 = vmatprep.subr.bf16.mxu1 %v443_v0 }
  0x58   :  { %317 = vmatpush3.bf16.msra.mxu1 %v341_v13 }
 0x116   :  { %v127_v15 = vpop.f32.mrb[0].mxu0 }
 0x117   :  { %v128_v16 = vadd.f32 %v269_v14, %v127_v15  ;;  %v300_v17 = vpop.f32.mrb[1].mxu0 }
 0x118   :  { %v130_v18 = vpop.f32.mrb[2].mxu0 }
 0x119   :  { %v131_v19 = vadd.f32 %v269_v14, %v130_v18  ;;  %v301_v20 = vpop.f32.mrb[3].mxu0  ;;  %v134_v21 = vmax.f32 %v128_v16, 0.0 }
 0x11b   :  { %v135_v22 = vmax.f32 %v131_v19, 0.0 }
 0x11d   :  { %v136_v23 = vpack.c.bf16 %v135_v22, %v134_v21 }
 0x11f   :  { %319 = vmatmul.mubr.bf16.vlgmr.msra.gmra.mrb[0].mxu1 %v136_v23 }
 0x1f2   :  { %v242_v25 = vpop.f32.mrb[0].mxu1 }
 0x1f3   :  { %v243_v26 = vadd.f32 %v273_v24, %v242_v25  ;;  %v320_v27 = vpop.f32.mrb[1].mxu1 }
 0x1f4   :  { %v245_v28 = vpop.f32.mrb[2].mxu1 }
 0x1f5   :  { %249 = vst [vmem:[#allocation8] sm:$0xff] %v243_v26  ;;  %v246_v29 = vadd.f32 %v273_v24, %v245_v28  ;;  %v321_v30 = vpop.f32.mrb[3].mxu1 }
 0x1f7   :  { %250 = vst [vmem:[#allocation8 + $0x8] sm:$0xff] %v246_v29 }
 0x1f8   :  { %255 = vsyncadd [#allocation4], 128  ;;  %s445_s2 = smov [#allocation8]  }
 0x1f9   :  { %s256_s10 = sshll.u32 %s445_s2, 4  ;;  %s257_s10 = int_to_ptr.vmem [resolvable:$true] %s256_s10 }
 0x1fa   :  { %s408_s11 = scalar_lea.vmem %s257_s10, 128  ;;  %s412_s12 = scalar_lea.vmem %s257_s10, 256 }
 0x1fb   :  { %p409_p10 = scmp.ne.s32.totalorder %s257_s10, %s408_s11  ;;  %p413_p11 = scmp.lt.s32.totalorder %s257_s10, %s257_s10 }
 0x1fc   :  { %p414_p12 = scmp.lt.s32.totalorder %s412_s12, %s408_s11 }
 0x1fe   :  { %p415_p13 = por %p414_p12, %p413_p11 }
 0x200   :  { %p416_p0 = pnand %p415_p13, %p409_p10 }
 0x202   :  { %419 = shalt.err (!%p416_p0)
}
 0x203   :  { %s420_s14 = scalar_lea.hbm %s547_s5, 128 }
 0x204   :  { %p421_p1 = scmp.ne.s32.totalorder %s547_s5, %s420_s14  ;;  %p424_p2 = scmp.lt.u32.totalorder %s420_s14, %s547_s5 }
 0x206   :  { %p426_p3 = pnand %p424_p2, %p421_p1 }
 0x208   :  { %429 = shalt.err (!%p426_p3)
}
 0x209   :  { %262 = dma.vmem_to_hbm [thread:$0]  %s257_s10, 128, %s547_s5, [#allocation4], %s440_s17, %s440_s17, %s441_s18  }
 0x20a   :  { %434 = dma.done.wait [#allocation4], 256  }
 0x20b   :  { %435 = vsyncadd [#allocation4], 4294967040 }
 0x20c   :  { %266 = vsyncpa [#allocation3], 1 }
 0x20d   :  { %267 = vsyncpa [#allocation6], 1 }
 0x20e   :  { %268 = vsyncpa [#allocation4], 1 }

</bundles_post_ra>
